<compile_context>
chip_gen: v5e
topology: v5e:2x2
jax: 0.10.0
libtpu: 0.0.40
codegen_flags: <defaults>
</compile_context>

<pallas_src>
import jax
import jax.numpy as jnp
from jax.experimental import pallas as pl
from jax.experimental.pallas import tpu as pltpu
import numpy as np

# ------------------------- sizes (small, consistent with forward) -----------
B = 2      # batch_size
S = 8      # seq_len
V = 32     # vocab_size
E = 16     # embedding dim
H = 32     # hidden dim
T = 8      # num_eval_points


# --------------------------- fused Seq2Seq kernel ----------------------------
def seq2seq_kernel(tok_ref, emb_ref, w_ih_ref, b_i_ref, w_hh_ref, b_hn_ref,
                   w_ode_ref, b_ode_ref, w_out_ref, b_out_ref, t_ref, out_ref):
    # tok_ref:   (S*B, 1) int32, row s*B+b holds tokens[b, s]     (VMEM)
    # emb_ref:   (V, E)   bf16 embedding table                    (VMEM)
    # w_ih_ref:  (E, 3H)  bf16 fused [r|z|n] input weights        (VMEM)
    # b_i_ref:   (1, 3H)  f32  b_ih with b_hh_r/b_hh_z folded in  (VMEM)
    # w_hh_ref:  (H, 3H)  bf16 fused recurrent weights            (VMEM)
    # b_hn_ref:  (1, H)   f32  recurrent bias of the n gate       (VMEM)
    # w_ode/b_ode, w_out/b_out: decoder weights (bf16) / biases (f32)
    # t_ref:     (T,)     f32 t_span                              (SMEM)
    # out_ref:   (T*B, V) f32 logits, row t*B+b                   (VMEM)

    # ---- embedding: one-hot(token) @ emb_table on the MXU (bf16 in, f32 acc)
    tok = tok_ref[...]                                             # (S*B, 1)
    col = jax.lax.broadcasted_iota(jnp.int32, (S * B, V), 1)       # (S*B, V)
    one_hot = jnp.where(col == tok, 1.0, 0.0).astype(jnp.bfloat16)
    x = jnp.dot(one_hot, emb_ref[...],
                preferred_element_type=jnp.float32)                # (S*B, E)

    # ---- hoisted GRU input projection: one (S*B,E)x(E,3H) matmul, biases folded
    gi_all = jnp.dot(x.astype(jnp.bfloat16), w_ih_ref[...],
                     preferred_element_type=jnp.float32) + b_i_ref[...]  # (S*B, 3H)

    w_hh = w_hh_ref[...]                                           # (H, 3H) bf16
    b_hn = b_hn_ref[...]                                           # (1, H)  f32

    # ---- GRU recurrence, fully unrolled (S static); ONE MXU push per step ---
    h = jnp.zeros((B, H), jnp.float32)
    for s in range(S):
        gi = gi_all[s * B:(s + 1) * B]                             # (B, 3H)
        gh = jnp.dot(h.astype(jnp.bfloat16), w_hh,
                     preferred_element_type=jnp.float32)           # (B, 3H)
        r = jax.nn.sigmoid(gi[:, 0:H] + gh[:, 0:H])
        z = jax.nn.sigmoid(gi[:, H:2 * H] + gh[:, H:2 * H])
        n = jnp.tanh(gi[:, 2 * H:3 * H] + r * (gh[:, 2 * H:3 * H] + b_hn))
        h = (1.0 - z) * n + z * h

    # ---- decoder: project BEFORE replicating over t (2+2 MXU rows, not 16) --
    h_bf = h.astype(jnp.bfloat16)
    f = jnp.tanh(jnp.dot(h_bf, w_ode_ref[...],
                         preferred_element_type=jnp.float32) + b_ode_ref[...])
    hW = jnp.dot(h_bf, w_out_ref[...],
                 preferred_element_type=jnp.float32) + b_out_ref[...]    # (B, V)
    fW = jnp.dot(f.astype(jnp.bfloat16), w_out_ref[...],
                 preferred_element_type=jnp.float32)                     # (B, V)

    # logits[t*B + b] = hW[b] + t_span[t] * fW[b]  (VPU scalar broadcast-madd)
    for t in range(T):
        out_ref[pl.ds(t * B, B), :] = hW + t_ref[t] * fW


# --------------------------- one-time weight folding -------------------------
def prepare_kernel_params(p):
    """Fuse gate weights, fold r/z recurrent biases, cast MXU operands to bf16."""
    w_ih = jnp.concatenate([p["w_ih"][0], p["w_ih"][1], p["w_ih"][2]], axis=1)
    w_hh = jnp.concatenate([p["w_hh"][0], p["w_hh"][1], p["w_hh"][2]], axis=1)
    b_i = jnp.concatenate([p["b_ih"][0] + p["b_hh"][0],
                           p["b_ih"][1] + p["b_hh"][1],
                           p["b_ih"][2]], axis=1)                  # (1, 3H) f32
    return {
        "emb":   p["emb_table"].astype(jnp.bfloat16),              # (V, E)
        "w_ih":  w_ih.astype(jnp.bfloat16),                        # (E, 3H)
        "b_i":   b_i.astype(jnp.float32),
        "w_hh":  w_hh.astype(jnp.bfloat16),                        # (H, 3H)
        "b_hn":  p["b_hh"][2].astype(jnp.float32),                 # (1, H)
        "w_ode": p["w_ode"].astype(jnp.bfloat16),
        "b_ode": p["b_ode"].astype(jnp.float32),
        "w_out": p["w_out"].astype(jnp.bfloat16),
        "b_out": p["b_out"].astype(jnp.float32),
    }


# ------------------------------- full model ---------------------------------
@jax.jit
def seq2seq_forward(tokens, t_span, kp):
    # Only remaining glue: reorder 16 int32 tokens to s*B+b row order (64 B).
    tok_col = jnp.transpose(tokens).reshape(S * B, 1).astype(jnp.int32)

    vmem = [pl.BlockSpec(memory_space=pltpu.MemorySpace.VMEM) for _ in range(10)]
    smem = pl.BlockSpec(memory_space=pltpu.MemorySpace.SMEM)

    out_flat = pl.pallas_call(
        seq2seq_kernel,
        out_shape=jax.ShapeDtypeStruct((T * B, V), jnp.float32),
        in_specs=vmem + [smem],
        out_specs=pl.BlockSpec(memory_space=pltpu.MemorySpace.VMEM),
        compiler_params=pltpu.CompilerParams(
            vmem_limit_bytes=16 * 1024 * 1024),
    )(tok_col, kp["emb"], kp["w_ih"], kp["b_i"], kp["w_hh"], kp["b_hn"],
      kp["w_ode"], kp["b_ode"], kp["w_out"], kp["b_out"],
      t_span.astype(jnp.float32))

    return out_flat.reshape(T, B, V)                               # (T, B, V)


# --------------------------- pure-JAX reference ------------------------------
def seq2seq_reference(tokens, t_span, params):
    emb = jnp.take(params["emb_table"], tokens, axis=0)            # (B, S, E)
    h = jnp.zeros((B, H), jnp.float32)
    for s in range(S):
        x_t = emb[:, s, :].astype(jnp.float32)
        gh_r = h @ params["w_hh"][0] + params["b_hh"][0]
        gh_z = h @ params["w_hh"][1] + params["b_hh"][1]
        gh_n = h @ params["w_hh"][2] + params["b_hh"][2]
        r = jax.nn.sigmoid(x_t @ params["w_ih"][0] + params["b_ih"][0] + gh_r)
        z = jax.nn.sigmoid(x_t @ params["w_ih"][1] + params["b_ih"][1] + gh_z)
        n = jnp.tanh(x_t @ params["w_ih"][2] + params["b_ih"][2] + r * gh_n)
        h = (1.0 - z) * n + z * h
    f = jnp.tanh(h @ params["w_ode"] + params["b_ode"])
    h_t = h[None] + t_span[:, None, None] * f[None]                # (T, B, H)
    return h_t @ params["w_out"] + params["b_out"]                 # (T, B, V)


# ----------------------------------- main ------------------------------------
if __name__ == "__main__":
    key = jax.random.PRNGKey(0)
    ks = jax.random.split(key, 10)

    params = {
        "emb_table": 0.1 * jax.random.normal(ks[0], (V, E), jnp.float32),
        "w_ih":      0.1 * jax.random.normal(ks[1], (3, E, H), jnp.float32),
        "w_hh":      0.1 * jax.random.normal(ks[2], (3, H, H), jnp.float32),
        "b_ih":      0.1 * jax.random.normal(ks[3], (3, 1, H), jnp.float32),
        "b_hh":      0.1 * jax.random.normal(ks[4], (3, 1, H), jnp.float32),
        "w_ode":     0.1 * jax.random.normal(ks[5], (H, H), jnp.float32),
        "b_ode":     0.1 * jax.random.normal(ks[6], (1, H), jnp.float32),
        "w_out":     0.1 * jax.random.normal(ks[7], (H, V), jnp.float32),
        "b_out":     0.1 * jax.random.normal(ks[8], (1, V), jnp.float32),
    }
    kparams = prepare_kernel_params(params)     # one-time fold (outside jit)

    tokens = jax.random.randint(ks[9], (B, S), 0, V, jnp.int32)
    t_span = jnp.linspace(0.0, 1.0, T).astype(jnp.float32)

    out = jax.block_until_ready(seq2seq_forward(tokens, t_span, kparams))
    ref = jax.block_until_ready(seq2seq_reference(tokens, t_span, params))

    assert out.shape == (T, B, V), out.shape
    # bf16 MXU operands (f32 accumulate) -> slightly looser tolerance than f32.
    np.testing.assert_allclose(np.asarray(out), np.asarray(ref),
                               rtol=1e-2, atol=1e-2)
    print("KERNEL_OK")
</pallas_src>

<mosaic_0001>
module attributes {stable_mosaic.version = 11 : i64} {
  func.func @seq2seq_kernel(%arg0: memref<16x1xi32, #tpu.memory_space<vmem>>, %arg1: memref<32x16xbf16, #tpu.memory_space<vmem>>, %arg2: memref<16x96xbf16, #tpu.memory_space<vmem>>, %arg3: memref<1x96xf32, #tpu.memory_space<vmem>>, %arg4: memref<32x96xbf16, #tpu.memory_space<vmem>>, %arg5: memref<1x32xf32, #tpu.memory_space<vmem>>, %arg6: memref<32x32xbf16, #tpu.memory_space<vmem>>, %arg7: memref<1x32xf32, #tpu.memory_space<vmem>>, %arg8: memref<32x32xbf16, #tpu.memory_space<vmem>>, %arg9: memref<1x32xf32, #tpu.memory_space<vmem>>, %arg10: memref<8xf32, #tpu.memory_space<smem>>, %arg11: memref<16x32xf32, #tpu.memory_space<vmem>>) attributes {dimension_semantics = [], scalar_prefetch = 0 : i64, scratch_operands = 0 : i64, tpu.core_type = #tpu.core_type<tc>} {
    %c0 = arith.constant 0 : index
    %c0_0 = arith.constant 0 : index
    %0 = vector.load %arg0[%c0, %c0_0] : memref<16x1xi32, #tpu.memory_space<vmem>>, vector<16x1xi32>
    %1 = tpu.iota {dimensions = array<i32: 1>} : vector<16x32xi32>
    %2 = vector.broadcast %0 : vector<16x1xi32> to vector<16x32xi32>
    %3 = arith.cmpi eq, %1, %2 : vector<16x32xi32>
    %cst = arith.constant 1.000000e+00 : f32
    %cst_1 = arith.constant 0.000000e+00 : f32
    %4 = vector.broadcast %cst : f32 to vector<16x32xf32>
    %5 = vector.broadcast %cst_1 : f32 to vector<16x32xf32>
    %6 = arith.select %3, %4, %5 : vector<16x32xi1>, vector<16x32xf32>
    %7 = arith.truncf %6 : vector<16x32xf32> to vector<16x32xbf16>
    %c0_2 = arith.constant 0 : index
    %c0_3 = arith.constant 0 : index
    %8 = vector.load %arg1[%c0_2, %c0_3] : memref<32x16xbf16, #tpu.memory_space<vmem>>, vector<32x16xbf16>
    %cst_4 = arith.constant dense<0.000000e+00> : vector<16x16xf32>
    %9 = tpu.matmul %7, %8, %cst_4 {dimension_numbers = #tpu.dot_dimension_numbers<[1], [0], [0], [1], [0, 0, 1, 1], [], []>} : vector<16x32xbf16>, vector<32x16xbf16>, vector<16x16xf32> -> vector<16x16xf32>
    %10 = arith.truncf %9 : vector<16x16xf32> to vector<16x16xbf16>
    %c0_5 = arith.constant 0 : index
    %c0_6 = arith.constant 0 : index
    %11 = vector.load %arg2[%c0_5, %c0_6] : memref<16x96xbf16, #tpu.memory_space<vmem>>, vector<16x96xbf16>
    %cst_7 = arith.constant dense<0.000000e+00> : vector<16x96xf32>
    %12 = tpu.matmul %10, %11, %cst_7 {dimension_numbers = #tpu.dot_dimension_numbers<[1], [0], [0], [1], [0, 0, 1, 1], [], []>} : vector<16x16xbf16>, vector<16x96xbf16>, vector<16x96xf32> -> vector<16x96xf32>
    %c0_8 = arith.constant 0 : index
    %c0_9 = arith.constant 0 : index
    %13 = vector.load %arg3[%c0_8, %c0_9] : memref<1x96xf32, #tpu.memory_space<vmem>>, vector<1x96xf32>
    %14 = vector.broadcast %13 : vector<1x96xf32> to vector<16x96xf32>
    %15 = arith.addf %12, %14 : vector<16x96xf32>
    %c0_10 = arith.constant 0 : index
    %c0_11 = arith.constant 0 : index
    %16 = vector.load %arg4[%c0_10, %c0_11] : memref<32x96xbf16, #tpu.memory_space<vmem>>, vector<32x96xbf16>
    %c0_12 = arith.constant 0 : index
    %c0_13 = arith.constant 0 : index
    %17 = vector.load %arg5[%c0_12, %c0_13] : memref<1x32xf32, #tpu.memory_space<vmem>>, vector<1x32xf32>
    %cst_14 = arith.constant 0.000000e+00 : f32
    %18 = vector.broadcast %cst_14 : f32 to vector<2x32xf32>
    %19 = vector.extract_strided_slice %15 {offsets = [0, 0], sizes = [2, 96], strides = [1, 1]} : vector<16x96xf32> to vector<2x96xf32>
    %20 = arith.truncf %18 : vector<2x32xf32> to vector<2x32xbf16>
    %cst_15 = arith.constant dense<0.000000e+00> : vector<2x96xf32>
    %21 = tpu.matmul %20, %16, %cst_15 {dimension_numbers = #tpu.dot_dimension_numbers<[1], [0], [0], [1], [0, 0, 1, 1], [], []>} : vector<2x32xbf16>, vector<32x96xbf16>, vector<2x96xf32> -> vector<2x96xf32>
    %22 = vector.extract_strided_slice %19 {offsets = [0, 0], sizes = [2, 32], strides = [1, 1]} : vector<2x96xf32> to vector<2x32xf32>
    %23 = vector.extract_strided_slice %21 {offsets = [0, 0], sizes = [2, 32], strides = [1, 1]} : vector<2x96xf32> to vector<2x32xf32>
    %24 = arith.addf %22, %23 : vector<2x32xf32>
    %25 = arith.negf %24 : vector<2x32xf32>
    %26 = math.exp %25 : vector<2x32xf32>
    %cst_16 = arith.constant 1.000000e+00 : f32
    %27 = vector.broadcast %cst_16 : f32 to vector<2x32xf32>
    %28 = arith.addf %27, %26 : vector<2x32xf32>
    %29 = arith.divf %27, %28 : vector<2x32xf32>
    %30 = vector.extract_strided_slice %19 {offsets = [0, 32], sizes = [2, 32], strides = [1, 1]} : vector<2x96xf32> to vector<2x32xf32>
    %31 = vector.extract_strided_slice %21 {offsets = [0, 32], sizes = [2, 32], strides = [1, 1]} : vector<2x96xf32> to vector<2x32xf32>
    %32 = arith.addf %30, %31 : vector<2x32xf32>
    %33 = arith.negf %32 : vector<2x32xf32>
    %34 = math.exp %33 : vector<2x32xf32>
    %cst_17 = arith.constant 1.000000e+00 : f32
    %35 = vector.broadcast %cst_17 : f32 to vector<2x32xf32>
    %36 = arith.addf %35, %34 : vector<2x32xf32>
    %37 = arith.divf %35, %36 : vector<2x32xf32>
    %38 = vector.extract_strided_slice %19 {offsets = [0, 64], sizes = [2, 32], strides = [1, 1]} : vector<2x96xf32> to vector<2x32xf32>
    %39 = vector.extract_strided_slice %21 {offsets = [0, 64], sizes = [2, 32], strides = [1, 1]} : vector<2x96xf32> to vector<2x32xf32>
    %40 = vector.broadcast %17 : vector<1x32xf32> to vector<2x32xf32>
    %41 = arith.addf %39, %40 : vector<2x32xf32>
    %42 = arith.mulf %29, %41 : vector<2x32xf32>
    %43 = arith.addf %38, %42 : vector<2x32xf32>
    %44 = math.tanh %43 : vector<2x32xf32>
    %cst_18 = arith.constant 1.000000e+00 : f32
    %45 = vector.broadcast %cst_18 : f32 to vector<2x32xf32>
    %46 = arith.subf %45, %37 : vector<2x32xf32>
    %47 = arith.mulf %46, %44 : vector<2x32xf32>
    %48 = arith.mulf %37, %18 : vector<2x32xf32>
    %49 = arith.addf %47, %48 : vector<2x32xf32>
    %50 = vector.extract_strided_slice %15 {offsets = [2, 0], sizes = [2, 96], strides = [1, 1]} : vector<16x96xf32> to vector<2x96xf32>
    %51 = arith.truncf %49 : vector<2x32xf32> to vector<2x32xbf16>
    %cst_19 = arith.constant dense<0.000000e+00> : vector<2x96xf32>
    %52 = tpu.matmul %51, %16, %cst_19 {dimension_numbers = #tpu.dot_dimension_numbers<[1], [0], [0], [1], [0, 0, 1, 1], [], []>} : vector<2x32xbf16>, vector<32x96xbf16>, vector<2x96xf32> -> vector<2x96xf32>
    %53 = vector.extract_strided_slice %50 {offsets = [0, 0], sizes = [2, 32], strides = [1, 1]} : vector<2x96xf32> to vector<2x32xf32>
    %54 = vector.extract_strided_slice %52 {offsets = [0, 0], sizes = [2, 32], strides = [1, 1]} : vector<2x96xf32> to vector<2x32xf32>
    %55 = arith.addf %53, %54 : vector<2x32xf32>
    %56 = arith.negf %55 : vector<2x32xf32>
    %57 = math.exp %56 : vector<2x32xf32>
    %cst_20 = arith.constant 1.000000e+00 : f32
    %58 = vector.broadcast %cst_20 : f32 to vector<2x32xf32>
    %59 = arith.addf %58, %57 : vector<2x32xf32>
    %60 = arith.divf %58, %59 : vector<2x32xf32>
    %61 = vector.extract_strided_slice %50 {offsets = [0, 32], sizes = [2, 32], strides = [1, 1]} : vector<2x96xf32> to vector<2x32xf32>
    %62 = vector.extract_strided_slice %52 {offsets = [0, 32], sizes = [2, 32], strides = [1, 1]} : vector<2x96xf32> to vector<2x32xf32>
    %63 = arith.addf %61, %62 : vector<2x32xf32>
    %64 = arith.negf %63 : vector<2x32xf32>
    %65 = math.exp %64 : vector<2x32xf32>
    %cst_21 = arith.constant 1.000000e+00 : f32
    %66 = vector.broadcast %cst_21 : f32 to vector<2x32xf32>
    %67 = arith.addf %66, %65 : vector<2x32xf32>
    %68 = arith.divf %66, %67 : vector<2x32xf32>
    %69 = vector.extract_strided_slice %50 {offsets = [0, 64], sizes = [2, 32], strides = [1, 1]} : vector<2x96xf32> to vector<2x32xf32>
    %70 = vector.extract_strided_slice %52 {offsets = [0, 64], sizes = [2, 32], strides = [1, 1]} : vector<2x96xf32> to vector<2x32xf32>
    %71 = vector.broadcast %17 : vector<1x32xf32> to vector<2x32xf32>
    %72 = arith.addf %70, %71 : vector<2x32xf32>
    %73 = arith.mulf %60, %72 : vector<2x32xf32>
    %74 = arith.addf %69, %73 : vector<2x32xf32>
    %75 = math.tanh %74 : vector<2x32xf32>
    %cst_22 = arith.constant 1.000000e+00 : f32
    %76 = vector.broadcast %cst_22 : f32 to vector<2x32xf32>
    %77 = arith.subf %76, %68 : vector<2x32xf32>
    %78 = arith.mulf %77, %75 : vector<2x32xf32>
    %79 = arith.mulf %68, %49 : vector<2x32xf32>
    %80 = arith.addf %78, %79 : vector<2x32xf32>
    %81 = vector.extract_strided_slice %15 {offsets = [4, 0], sizes = [2, 96], strides = [1, 1]} : vector<16x96xf32> to vector<2x96xf32>
    %82 = arith.truncf %80 : vector<2x32xf32> to vector<2x32xbf16>
    %cst_23 = arith.constant dense<0.000000e+00> : vector<2x96xf32>
    %83 = tpu.matmul %82, %16, %cst_23 {dimension_numbers = #tpu.dot_dimension_numbers<[1], [0], [0], [1], [0, 0, 1, 1], [], []>} : vector<2x32xbf16>, vector<32x96xbf16>, vector<2x96xf32> -> vector<2x96xf32>
    %84 = vector.extract_strided_slice %81 {offsets = [0, 0], sizes = [2, 32], strides = [1, 1]} : vector<2x96xf32> to vector<2x32xf32>
    %85 = vector.extract_strided_slice %83 {offsets = [0, 0], sizes = [2, 32], strides = [1, 1]} : vector<2x96xf32> to vector<2x32xf32>
    %86 = arith.addf %84, %85 : vector<2x32xf32>
    %87 = arith.negf %86 : vector<2x32xf32>
    %88 = math.exp %87 : vector<2x32xf32>
    %cst_24 = arith.constant 1.000000e+00 : f32
    %89 = vector.broadcast %cst_24 : f32 to vector<2x32xf32>
    %90 = arith.addf %89, %88 : vector<2x32xf32>
    %91 = arith.divf %89, %90 : vector<2x32xf32>
    %92 = vector.extract_strided_slice %81 {offsets = [0, 32], sizes = [2, 32], strides = [1, 1]} : vector<2x96xf32> to vector<2x32xf32>
    %93 = vector.extract_strided_slice %83 {offsets = [0, 32], sizes = [2, 32], strides = [1, 1]} : vector<2x96xf32> to vector<2x32xf32>
    %94 = arith.addf %92, %93 : vector<2x32xf32>
    %95 = arith.negf %94 : vector<2x32xf32>
    %96 = math.exp %95 : vector<2x32xf32>
    %cst_25 = arith.constant 1.000000e+00 : f32
    %97 = vector.broadcast %cst_25 : f32 to vector<2x32xf32>
    %98 = arith.addf %97, %96 : vector<2x32xf32>
    %99 = arith.divf %97, %98 : vector<2x32xf32>
    %100 = vector.extract_strided_slice %81 {offsets = [0, 64], sizes = [2, 32], strides = [1, 1]} : vector<2x96xf32> to vector<2x32xf32>
    %101 = vector.extract_strided_slice %83 {offsets = [0, 64], sizes = [2, 32], strides = [1, 1]} : vector<2x96xf32> to vector<2x32xf32>
    %102 = vector.broadcast %17 : vector<1x32xf32> to vector<2x32xf32>
    %103 = arith.addf %101, %102 : vector<2x32xf32>
    %104 = arith.mulf %91, %103 : vector<2x32xf32>
    %105 = arith.addf %100, %104 : vector<2x32xf32>
    %106 = math.tanh %105 : vector<2x32xf32>
    %cst_26 = arith.constant 1.000000e+00 : f32
    %107 = vector.broadcast %cst_26 : f32 to vector<2x32xf32>
    %108 = arith.subf %107, %99 : vector<2x32xf32>
    %109 = arith.mulf %108, %106 : vector<2x32xf32>
    %110 = arith.mulf %99, %80 : vector<2x32xf32>
    %111 = arith.addf %109, %110 : vector<2x32xf32>
    %112 = vector.extract_strided_slice %15 {offsets = [6, 0], sizes = [2, 96], strides = [1, 1]} : vector<16x96xf32> to vector<2x96xf32>
    %113 = arith.truncf %111 : vector<2x32xf32> to vector<2x32xbf16>
    %cst_27 = arith.constant dense<0.000000e+00> : vector<2x96xf32>
    %114 = tpu.matmul %113, %16, %cst_27 {dimension_numbers = #tpu.dot_dimension_numbers<[1], [0], [0], [1], [0, 0, 1, 1], [], []>} : vector<2x32xbf16>, vector<32x96xbf16>, vector<2x96xf32> -> vector<2x96xf32>
    %115 = vector.extract_strided_slice %112 {offsets = [0, 0], sizes = [2, 32], strides = [1, 1]} : vector<2x96xf32> to vector<2x32xf32>
    %116 = vector.extract_strided_slice %114 {offsets = [0, 0], sizes = [2, 32], strides = [1, 1]} : vector<2x96xf32> to vector<2x32xf32>
    %117 = arith.addf %115, %116 : vector<2x32xf32>
    %118 = arith.negf %117 : vector<2x32xf32>
    %119 = math.exp %118 : vector<2x32xf32>
    %cst_28 = arith.constant 1.000000e+00 : f32
    %120 = vector.broadcast %cst_28 : f32 to vector<2x32xf32>
    %121 = arith.addf %120, %119 : vector<2x32xf32>
    %122 = arith.divf %120, %121 : vector<2x32xf32>
    %123 = vector.extract_strided_slice %112 {offsets = [0, 32], sizes = [2, 32], strides = [1, 1]} : vector<2x96xf32> to vector<2x32xf32>
    %124 = vector.extract_strided_slice %114 {offsets = [0, 32], sizes = [2, 32], strides = [1, 1]} : vector<2x96xf32> to vector<2x32xf32>
    %125 = arith.addf %123, %124 : vector<2x32xf32>
    %126 = arith.negf %125 : vector<2x32xf32>
    %127 = math.exp %126 : vector<2x32xf32>
    %cst_29 = arith.constant 1.000000e+00 : f32
    %128 = vector.broadcast %cst_29 : f32 to vector<2x32xf32>
    %129 = arith.addf %128, %127 : vector<2x32xf32>
    %130 = arith.divf %128, %129 : vector<2x32xf32>
    %131 = vector.extract_strided_slice %112 {offsets = [0, 64], sizes = [2, 32], strides = [1, 1]} : vector<2x96xf32> to vector<2x32xf32>
    %132 = vector.extract_strided_slice %114 {offsets = [0, 64], sizes = [2, 32], strides = [1, 1]} : vector<2x96xf32> to vector<2x32xf32>
    %133 = vector.broadcast %17 : vector<1x32xf32> to vector<2x32xf32>
    %134 = arith.addf %132, %133 : vector<2x32xf32>
    %135 = arith.mulf %122, %134 : vector<2x32xf32>
    %136 = arith.addf %131, %135 : vector<2x32xf32>
    %137 = math.tanh %136 : vector<2x32xf32>
    %cst_30 = arith.constant 1.000000e+00 : f32
    %138 = vector.broadcast %cst_30 : f32 to vector<2x32xf32>
    %139 = arith.subf %138, %130 : vector<2x32xf32>
    %140 = arith.mulf %139, %137 : vector<2x32xf32>
    %141 = arith.mulf %130, %111 : vector<2x32xf32>
    %142 = arith.addf %140, %141 : vector<2x32xf32>
    %143 = vector.extract_strided_slice %15 {offsets = [8, 0], sizes = [2, 96], strides = [1, 1]} : vector<16x96xf32> to vector<2x96xf32>
    %144 = arith.truncf %142 : vector<2x32xf32> to vector<2x32xbf16>
    %cst_31 = arith.constant dense<0.000000e+00> : vector<2x96xf32>
    %145 = tpu.matmul %144, %16, %cst_31 {dimension_numbers = #tpu.dot_dimension_numbers<[1], [0], [0], [1], [0, 0, 1, 1], [], []>} : vector<2x32xbf16>, vector<32x96xbf16>, vector<2x96xf32> -> vector<2x96xf32>
    %146 = vector.extract_strided_slice %143 {offsets = [0, 0], sizes = [2, 32], strides = [1, 1]} : vector<2x96xf32> to vector<2x32xf32>
    %147 = vector.extract_strided_slice %145 {offsets = [0, 0], sizes = [2, 32], strides = [1, 1]} : vector<2x96xf32> to vector<2x32xf32>
    %148 = arith.addf %146, %147 : vector<2x32xf32>
    %149 = arith.negf %148 : vector<2x32xf32>
    %150 = math.exp %149 : vector<2x32xf32>
    %cst_32 = arith.constant 1.000000e+00 : f32
    %151 = vector.broadcast %cst_32 : f32 to vector<2x32xf32>
    %152 = arith.addf %151, %150 : vector<2x32xf32>
    %153 = arith.divf %151, %152 : vector<2x32xf32>
    %154 = vector.extract_strided_slice %143 {offsets = [0, 32], sizes = [2, 32], strides = [1, 1]} : vector<2x96xf32> to vector<2x32xf32>
    %155 = vector.extract_strided_slice %145 {offsets = [0, 32], sizes = [2, 32], strides = [1, 1]} : vector<2x96xf32> to vector<2x32xf32>
    %156 = arith.addf %154, %155 : vector<2x32xf32>
    %157 = arith.negf %156 : vector<2x32xf32>
    %158 = math.exp %157 : vector<2x32xf32>
    %cst_33 = arith.constant 1.000000e+00 : f32
    %159 = vector.broadcast %cst_33 : f32 to vector<2x32xf32>
    %160 = arith.addf %159, %158 : vector<2x32xf32>
    %161 = arith.divf %159, %160 : vector<2x32xf32>
    %162 = vector.extract_strided_slice %143 {offsets = [0, 64], sizes = [2, 32], strides = [1, 1]} : vector<2x96xf32> to vector<2x32xf32>
    %163 = vector.extract_strided_slice %145 {offsets = [0, 64], sizes = [2, 32], strides = [1, 1]} : vector<2x96xf32> to vector<2x32xf32>
    %164 = vector.broadcast %17 : vector<1x32xf32> to vector<2x32xf32>
    %165 = arith.addf %163, %164 : vector<2x32xf32>
    %166 = arith.mulf %153, %165 : vector<2x32xf32>
    %167 = arith.addf %162, %166 : vector<2x32xf32>
    %168 = math.tanh %167 : vector<2x32xf32>
    %cst_34 = arith.constant 1.000000e+00 : f32
    %169 = vector.broadcast %cst_34 : f32 to vector<2x32xf32>
    %170 = arith.subf %169, %161 : vector<2x32xf32>
    %171 = arith.mulf %170, %168 : vector<2x32xf32>
    %172 = arith.mulf %161, %142 : vector<2x32xf32>
    %173 = arith.addf %171, %172 : vector<2x32xf32>
    %174 = vector.extract_strided_slice %15 {offsets = [10, 0], sizes = [2, 96], strides = [1, 1]} : vector<16x96xf32> to vector<2x96xf32>
    %175 = arith.truncf %173 : vector<2x32xf32> to vector<2x32xbf16>
    %cst_35 = arith.constant dense<0.000000e+00> : vector<2x96xf32>
    %176 = tpu.matmul %175, %16, %cst_35 {dimension_numbers = #tpu.dot_dimension_numbers<[1], [0], [0], [1], [0, 0, 1, 1], [], []>} : vector<2x32xbf16>, vector<32x96xbf16>, vector<2x96xf32> -> vector<2x96xf32>
    %177 = vector.extract_strided_slice %174 {offsets = [0, 0], sizes = [2, 32], strides = [1, 1]} : vector<2x96xf32> to vector<2x32xf32>
    %178 = vector.extract_strided_slice %176 {offsets = [0, 0], sizes = [2, 32], strides = [1, 1]} : vector<2x96xf32> to vector<2x32xf32>
    %179 = arith.addf %177, %178 : vector<2x32xf32>
    %180 = arith.negf %179 : vector<2x32xf32>
    %181 = math.exp %180 : vector<2x32xf32>
    %cst_36 = arith.constant 1.000000e+00 : f32
    %182 = vector.broadcast %cst_36 : f32 to vector<2x32xf32>
    %183 = arith.addf %182, %181 : vector<2x32xf32>
    %184 = arith.divf %182, %183 : vector<2x32xf32>
    %185 = vector.extract_strided_slice %174 {offsets = [0, 32], sizes = [2, 32], strides = [1, 1]} : vector<2x96xf32> to vector<2x32xf32>
    %186 = vector.extract_strided_slice %176 {offsets = [0, 32], sizes = [2, 32], strides = [1, 1]} : vector<2x96xf32> to vector<2x32xf32>
    %187 = arith.addf %185, %186 : vector<2x32xf32>
    %188 = arith.negf %187 : vector<2x32xf32>
    %189 = math.exp %188 : vector<2x32xf32>
    %cst_37 = arith.constant 1.000000e+00 : f32
    %190 = vector.broadcast %cst_37 : f32 to vector<2x32xf32>
    %191 = arith.addf %190, %189 : vector<2x32xf32>
    %192 = arith.divf %190, %191 : vector<2x32xf32>
    %193 = vector.extract_strided_slice %174 {offsets = [0, 64], sizes = [2, 32], strides = [1, 1]} : vector<2x96xf32> to vector<2x32xf32>
    %194 = vector.extract_strided_slice %176 {offsets = [0, 64], sizes = [2, 32], strides = [1, 1]} : vector<2x96xf32> to vector<2x32xf32>
    %195 = vector.broadcast %17 : vector<1x32xf32> to vector<2x32xf32>
    %196 = arith.addf %194, %195 : vector<2x32xf32>
    %197 = arith.mulf %184, %196 : vector<2x32xf32>
    %198 = arith.addf %193, %197 : vector<2x32xf32>
    %199 = math.tanh %198 : vector<2x32xf32>
    %cst_38 = arith.constant 1.000000e+00 : f32
    %200 = vector.broadcast %cst_38 : f32 to vector<2x32xf32>
    %201 = arith.subf %200, %192 : vector<2x32xf32>
    %202 = arith.mulf %201, %199 : vector<2x32xf32>
    %203 = arith.mulf %192, %173 : vector<2x32xf32>
    %204 = arith.addf %202, %203 : vector<2x32xf32>
    %205 = vector.extract_strided_slice %15 {offsets = [12, 0], sizes = [2, 96], strides = [1, 1]} : vector<16x96xf32> to vector<2x96xf32>
    %206 = arith.truncf %204 : vector<2x32xf32> to vector<2x32xbf16>
    %cst_39 = arith.constant dense<0.000000e+00> : vector<2x96xf32>
    %207 = tpu.matmul %206, %16, %cst_39 {dimension_numbers = #tpu.dot_dimension_numbers<[1], [0], [0], [1], [0, 0, 1, 1], [], []>} : vector<2x32xbf16>, vector<32x96xbf16>, vector<2x96xf32> -> vector<2x96xf32>
    %208 = vector.extract_strided_slice %205 {offsets = [0, 0], sizes = [2, 32], strides = [1, 1]} : vector<2x96xf32> to vector<2x32xf32>
    %209 = vector.extract_strided_slice %207 {offsets = [0, 0], sizes = [2, 32], strides = [1, 1]} : vector<2x96xf32> to vector<2x32xf32>
    %210 = arith.addf %208, %209 : vector<2x32xf32>
    %211 = arith.negf %210 : vector<2x32xf32>
    %212 = math.exp %211 : vector<2x32xf32>
    %cst_40 = arith.constant 1.000000e+00 : f32
    %213 = vector.broadcast %cst_40 : f32 to vector<2x32xf32>
    %214 = arith.addf %213, %212 : vector<2x32xf32>
    %215 = arith.divf %213, %214 : vector<2x32xf32>
    %216 = vector.extract_strided_slice %205 {offsets = [0, 32], sizes = [2, 32], strides = [1, 1]} : vector<2x96xf32> to vector<2x32xf32>
    %217 = vector.extract_strided_slice %207 {offsets = [0, 32], sizes = [2, 32], strides = [1, 1]} : vector<2x96xf32> to vector<2x32xf32>
    %218 = arith.addf %216, %217 : vector<2x32xf32>
    %219 = arith.negf %218 : vector<2x32xf32>
    %220 = math.exp %219 : vector<2x32xf32>
    %cst_41 = arith.constant 1.000000e+00 : f32
    %221 = vector.broadcast %cst_41 : f32 to vector<2x32xf32>
    %222 = arith.addf %221, %220 : vector<2x32xf32>
    %223 = arith.divf %221, %222 : vector<2x32xf32>
    %224 = vector.extract_strided_slice %205 {offsets = [0, 64], sizes = [2, 32], strides = [1, 1]} : vector<2x96xf32> to vector<2x32xf32>
    %225 = vector.extract_strided_slice %207 {offsets = [0, 64], sizes = [2, 32], strides = [1, 1]} : vector<2x96xf32> to vector<2x32xf32>
    %226 = vector.broadcast %17 : vector<1x32xf32> to vector<2x32xf32>
    %227 = arith.addf %225, %226 : vector<2x32xf32>
    %228 = arith.mulf %215, %227 : vector<2x32xf32>
    %229 = arith.addf %224, %228 : vector<2x32xf32>
    %230 = math.tanh %229 : vector<2x32xf32>
    %cst_42 = arith.constant 1.000000e+00 : f32
    %231 = vector.broadcast %cst_42 : f32 to vector<2x32xf32>
    %232 = arith.subf %231, %223 : vector<2x32xf32>
    %233 = arith.mulf %232, %230 : vector<2x32xf32>
    %234 = arith.mulf %223, %204 : vector<2x32xf32>
    %235 = arith.addf %233, %234 : vector<2x32xf32>
    %236 = vector.extract_strided_slice %15 {offsets = [14, 0], sizes = [2, 96], strides = [1, 1]} : vector<16x96xf32> to vector<2x96xf32>
    %237 = arith.truncf %235 : vector<2x32xf32> to vector<2x32xbf16>
    %cst_43 = arith.constant dense<0.000000e+00> : vector<2x96xf32>
    %238 = tpu.matmul %237, %16, %cst_43 {dimension_numbers = #tpu.dot_dimension_numbers<[1], [0], [0], [1], [0, 0, 1, 1], [], []>} : vector<2x32xbf16>, vector<32x96xbf16>, vector<2x96xf32> -> vector<2x96xf32>
    %239 = vector.extract_strided_slice %236 {offsets = [0, 0], sizes = [2, 32], strides = [1, 1]} : vector<2x96xf32> to vector<2x32xf32>
    %240 = vector.extract_strided_slice %238 {offsets = [0, 0], sizes = [2, 32], strides = [1, 1]} : vector<2x96xf32> to vector<2x32xf32>
    %241 = arith.addf %239, %240 : vector<2x32xf32>
    %242 = arith.negf %241 : vector<2x32xf32>
    %243 = math.exp %242 : vector<2x32xf32>
    %cst_44 = arith.constant 1.000000e+00 : f32
    %244 = vector.broadcast %cst_44 : f32 to vector<2x32xf32>
    %245 = arith.addf %244, %243 : vector<2x32xf32>
    %246 = arith.divf %244, %245 : vector<2x32xf32>
    %247 = vector.extract_strided_slice %236 {offsets = [0, 32], sizes = [2, 32], strides = [1, 1]} : vector<2x96xf32> to vector<2x32xf32>
    %248 = vector.extract_strided_slice %238 {offsets = [0, 32], sizes = [2, 32], strides = [1, 1]} : vector<2x96xf32> to vector<2x32xf32>
    %249 = arith.addf %247, %248 : vector<2x32xf32>
    %250 = arith.negf %249 : vector<2x32xf32>
    %251 = math.exp %250 : vector<2x32xf32>
    %cst_45 = arith.constant 1.000000e+00 : f32
    %252 = vector.broadcast %cst_45 : f32 to vector<2x32xf32>
    %253 = arith.addf %252, %251 : vector<2x32xf32>
    %254 = arith.divf %252, %253 : vector<2x32xf32>
    %255 = vector.extract_strided_slice %236 {offsets = [0, 64], sizes = [2, 32], strides = [1, 1]} : vector<2x96xf32> to vector<2x32xf32>
    %256 = vector.extract_strided_slice %238 {offsets = [0, 64], sizes = [2, 32], strides = [1, 1]} : vector<2x96xf32> to vector<2x32xf32>
    %257 = vector.broadcast %17 : vector<1x32xf32> to vector<2x32xf32>
    %258 = arith.addf %256, %257 : vector<2x32xf32>
    %259 = arith.mulf %246, %258 : vector<2x32xf32>
    %260 = arith.addf %255, %259 : vector<2x32xf32>
    %261 = math.tanh %260 : vector<2x32xf32>
    %cst_46 = arith.constant 1.000000e+00 : f32
    %262 = vector.broadcast %cst_46 : f32 to vector<2x32xf32>
    %263 = arith.subf %262, %254 : vector<2x32xf32>
    %264 = arith.mulf %263, %261 : vector<2x32xf32>
    %265 = arith.mulf %254, %235 : vector<2x32xf32>
    %266 = arith.addf %264, %265 : vector<2x32xf32>
    %267 = arith.truncf %266 : vector<2x32xf32> to vector<2x32xbf16>
    %c0_47 = arith.constant 0 : index
    %c0_48 = arith.constant 0 : index
    %268 = vector.load %arg6[%c0_47, %c0_48] : memref<32x32xbf16, #tpu.memory_space<vmem>>, vector<32x32xbf16>
    %cst_49 = arith.constant dense<0.000000e+00> : vector<2x32xf32>
    %269 = tpu.matmul %267, %268, %cst_49 {dimension_numbers = #tpu.dot_dimension_numbers<[1], [0], [0], [1], [0, 0, 1, 1], [], []>} : vector<2x32xbf16>, vector<32x32xbf16>, vector<2x32xf32> -> vector<2x32xf32>
    %c0_50 = arith.constant 0 : index
    %c0_51 = arith.constant 0 : index
    %270 = vector.load %arg7[%c0_50, %c0_51] : memref<1x32xf32, #tpu.memory_space<vmem>>, vector<1x32xf32>
    %271 = vector.broadcast %270 : vector<1x32xf32> to vector<2x32xf32>
    %272 = arith.addf %269, %271 : vector<2x32xf32>
    %273 = math.tanh %272 : vector<2x32xf32>
    %c0_52 = arith.constant 0 : index
    %c0_53 = arith.constant 0 : index
    %274 = vector.load %arg8[%c0_52, %c0_53] : memref<32x32xbf16, #tpu.memory_space<vmem>>, vector<32x32xbf16>
    %cst_54 = arith.constant dense<0.000000e+00> : vector<2x32xf32>
    %275 = tpu.matmul %267, %274, %cst_54 {dimension_numbers = #tpu.dot_dimension_numbers<[1], [0], [0], [1], [0, 0, 1, 1], [], []>} : vector<2x32xbf16>, vector<32x32xbf16>, vector<2x32xf32> -> vector<2x32xf32>
    %c0_55 = arith.constant 0 : index
    %c0_56 = arith.constant 0 : index
    %276 = vector.load %arg9[%c0_55, %c0_56] : memref<1x32xf32, #tpu.memory_space<vmem>>, vector<1x32xf32>
    %277 = vector.broadcast %276 : vector<1x32xf32> to vector<2x32xf32>
    %278 = arith.addf %275, %277 : vector<2x32xf32>
    %279 = arith.truncf %273 : vector<2x32xf32> to vector<2x32xbf16>
    %c0_57 = arith.constant 0 : index
    %c0_58 = arith.constant 0 : index
    %280 = vector.load %arg8[%c0_57, %c0_58] : memref<32x32xbf16, #tpu.memory_space<vmem>>, vector<32x32xbf16>
    %cst_59 = arith.constant dense<0.000000e+00> : vector<2x32xf32>
    %281 = tpu.matmul %279, %280, %cst_59 {dimension_numbers = #tpu.dot_dimension_numbers<[1], [0], [0], [1], [0, 0, 1, 1], [], []>} : vector<2x32xbf16>, vector<32x32xbf16>, vector<2x32xf32> -> vector<2x32xf32>
    %c0_60 = arith.constant 0 : index
    %282 = memref.load %arg10[%c0_60] : memref<8xf32, #tpu.memory_space<smem>>
    %283 = vector.broadcast %282 : f32 to vector<2x32xf32>
    %284 = arith.mulf %283, %281 : vector<2x32xf32>
    %285 = arith.addf %278, %284 : vector<2x32xf32>
    %c0_61 = arith.constant 0 : index
    %c0_62 = arith.constant 0 : index
    %286 = vector.load %arg11[%c0_61, %c0_62] : memref<16x32xf32, #tpu.memory_space<vmem>>, vector<2x32xf32>
    tpu.vector_store %arg11[%c0_61, %c0_62], %285 {strides = array<i32>} : memref<16x32xf32, #tpu.memory_space<vmem>>, vector<2x32xf32>,
    %c1 = arith.constant 1 : index
    %287 = memref.load %arg10[%c1] : memref<8xf32, #tpu.memory_space<smem>>
    %288 = vector.broadcast %287 : f32 to vector<2x32xf32>
    %289 = arith.mulf %288, %281 : vector<2x32xf32>
    %290 = arith.addf %278, %289 : vector<2x32xf32>
    %c2 = arith.constant 2 : index
    %c0_63 = arith.constant 0 : index
    %291 = vector.load %arg11[%c2, %c0_63] : memref<16x32xf32, #tpu.memory_space<vmem>>, vector<2x32xf32>
    tpu.vector_store %arg11[%c2, %c0_63], %290 {strides = array<i32>} : memref<16x32xf32, #tpu.memory_space<vmem>>, vector<2x32xf32>,
    %c2_64 = arith.constant 2 : index
    %292 = memref.load %arg10[%c2_64] : memref<8xf32, #tpu.memory_space<smem>>
    %293 = vector.broadcast %292 : f32 to vector<2x32xf32>
    %294 = arith.mulf %293, %281 : vector<2x32xf32>
    %295 = arith.addf %278, %294 : vector<2x32xf32>
    %c4 = arith.constant 4 : index
    %c0_65 = arith.constant 0 : index
    %296 = vector.load %arg11[%c4, %c0_65] : memref<16x32xf32, #tpu.memory_space<vmem>>, vector<2x32xf32>
    tpu.vector_store %arg11[%c4, %c0_65], %295 {strides = array<i32>} : memref<16x32xf32, #tpu.memory_space<vmem>>, vector<2x32xf32>,
    %c3 = arith.constant 3 : index
    %297 = memref.load %arg10[%c3] : memref<8xf32, #tpu.memory_space<smem>>
    %298 = vector.broadcast %297 : f32 to vector<2x32xf32>
    %299 = arith.mulf %298, %281 : vector<2x32xf32>
    %300 = arith.addf %278, %299 : vector<2x32xf32>
    %c6 = arith.constant 6 : index
    %c0_66 = arith.constant 0 : index
    %301 = vector.load %arg11[%c6, %c0_66] : memref<16x32xf32, #tpu.memory_space<vmem>>, vector<2x32xf32>
    tpu.vector_store %arg11[%c6, %c0_66], %300 {strides = array<i32>} : memref<16x32xf32, #tpu.memory_space<vmem>>, vector<2x32xf32>,
    %c4_67 = arith.constant 4 : index
    %302 = memref.load %arg10[%c4_67] : memref<8xf32, #tpu.memory_space<smem>>
    %303 = vector.broadcast %302 : f32 to vector<2x32xf32>
    %304 = arith.mulf %303, %281 : vector<2x32xf32>
    %305 = arith.addf %278, %304 : vector<2x32xf32>
    %c8 = arith.constant 8 : index
    %c0_68 = arith.constant 0 : index
    %306 = vector.load %arg11[%c8, %c0_68] : memref<16x32xf32, #tpu.memory_space<vmem>>, vector<2x32xf32>
    tpu.vector_store %arg11[%c8, %c0_68], %305 {strides = array<i32>} : memref<16x32xf32, #tpu.memory_space<vmem>>, vector<2x32xf32>,
    %c5 = arith.constant 5 : index
    %307 = memref.load %arg10[%c5] : memref<8xf32, #tpu.memory_space<smem>>
    %308 = vector.broadcast %307 : f32 to vector<2x32xf32>
    %309 = arith.mulf %308, %281 : vector<2x32xf32>
    %310 = arith.addf %278, %309 : vector<2x32xf32>
    %c10 = arith.constant 10 : index
    %c0_69 = arith.constant 0 : index
    %311 = vector.load %arg11[%c10, %c0_69] : memref<16x32xf32, #tpu.memory_space<vmem>>, vector<2x32xf32>
    tpu.vector_store %arg11[%c10, %c0_69], %310 {strides = array<i32>} : memref<16x32xf32, #tpu.memory_space<vmem>>, vector<2x32xf32>,
    %c6_70 = arith.constant 6 : index
    %312 = memref.load %arg10[%c6_70] : memref<8xf32, #tpu.memory_space<smem>>
    %313 = vector.broadcast %312 : f32 to vector<2x32xf32>
    %314 = arith.mulf %313, %281 : vector<2x32xf32>
    %315 = arith.addf %278, %314 : vector<2x32xf32>
    %c12 = arith.constant 12 : index
    %c0_71 = arith.constant 0 : index
    %316 = vector.load %arg11[%c12, %c0_71] : memref<16x32xf32, #tpu.memory_space<vmem>>, vector<2x32xf32>
    tpu.vector_store %arg11[%c12, %c0_71], %315 {strides = array<i32>} : memref<16x32xf32, #tpu.memory_space<vmem>>, vector<2x32xf32>,
    %c7 = arith.constant 7 : index
    %317 = memref.load %arg10[%c7] : memref<8xf32, #tpu.memory_space<smem>>
    %318 = vector.broadcast %317 : f32 to vector<2x32xf32>
    %319 = arith.mulf %318, %281 : vector<2x32xf32>
    %320 = arith.addf %278, %319 : vector<2x32xf32>
    %c14 = arith.constant 14 : index
    %c0_72 = arith.constant 0 : index
    %321 = vector.load %arg11[%c14, %c0_72] : memref<16x32xf32, #tpu.memory_space<vmem>>, vector<2x32xf32>
    tpu.vector_store %arg11[%c14, %c0_72], %320 {strides = array<i32>} : memref<16x32xf32, #tpu.memory_space<vmem>>, vector<2x32xf32>,
    return
  }
}

</mosaic_0001>

<bundles_post_ra>
// kernel: seq2seq_forward.1
= control target key start
LH: loop header
LB: loop body
LE: loop exit
PB: predicated region body
PF: predicated region fallthrough
CT: control target
= control target key end

     0   :  { %16 = vsyncpa [#allocation3], 0  ;;  %s1384_s0 = inlined_call_operand.vmem [shape: s32[16,1], index: 0, kind: input, shape index: {}]   ;;  %s1385_s1 = inlined_call_operand.vmem [shape: bf16[32,16], index: 1, kind: input, shape index: {}]   ;;  %s1386_s2 = inlined_call_operand.vmem [shape: bf16[16,96], index: 2, kind: input, shape index: {}]   ;;  %s1387_s3 = inlined_call_operand.hbm [shape: f32[1,96], index: 3, kind: input, shape index: {}]   ;;  %s1388_s4 = inlined_call_operand.vmem [shape: bf16[32,96], index: 4, kind: input, shape index: {}]   ;;  %s1389_s5 = inlined_call_operand.hbm [shape: f32[1,32], index: 5, kind: input, shape index: {}]   ;;  %s1390_s6 = inlined_call_operand.vmem [shape: bf16[32,32], index: 6, kind: input, shape index: {}]   ;;  %s1391_s7 = inlined_call_operand.hbm [shape: f32[1,32], index: 7, kind: input, shape index: {}]   ;;  %s1392_s8 = inlined_call_operand.vmem [shape: bf16[32,32], index: 8, kind: input, shape index: {}]   ;;  %s1393_s9 = inlined_call_operand.hbm [shape: f32[1,32], index: 9, kind: input, shape index: {}]   ;;  %s1394_s10 = inlined_call_operand.hbm [shape: f32[8], index: 10, kind: input, shape index: {}]   ;;  %s1395_s11 = inlined_call_operand.hbm [shape: f32[16,32], index: 11, kind: output, shape index: {}]  }
   0x1   :  { %17 = vsyncpa [#allocation7], 0 }
   0x2   :  { %18 = vsyncpa [#allocation10], 0 }
   0x3   :  { %19 = vsyncpa [#allocation5], 0  ;;  %s45_s19 = sshll.u32 %s1389_s5, 4  ;;  %s46_s19 = int_to_ptr.hbm [resolvable:$true] %s45_s19 }
   0x4   :  { %20 = vsyncpa [#allocation4], 0  ;;  %s1172_s20 = smov [#allocation6]   ;;  %s32_s24 = sshll.u32 %s1387_s3, 4  ;;  %s33_s24 = int_to_ptr.hbm [resolvable:$true] %s32_s24 }
   0x5   :  { %s47_s21 = sshll.u32 %s1172_s20, 4  ;;  %s1173_s25 = smov [#allocation2]   ;;  %s48_s21 = int_to_ptr.vmem [resolvable:$true] %s47_s21 }
   0x6   :  { %50 = dma.hbm_to_vmem [thread:$0]  %s46_s19, 16, %s48_s21, [#allocation7]  }
   0x7   :  { %s34_s26 = sshll.u32 %s1173_s25, 4  ;;  %s58_s29 = sshll.u32 %s1391_s7, 4  ;;  %s35_s26 = int_to_ptr.vmem [resolvable:$true] %s34_s26  ;;  %s59_s29 = int_to_ptr.hbm [resolvable:$true] %s58_s29 }
   0x8   :  { %37 = dma.hbm_to_vmem [thread:$0]  %s33_s24, 16, %s35_s26, [#allocation3]  }
   0x9   :  { %s71_s12 = sshll.u32 %s1393_s9, 4  ;;  %s1174_s13 = smov [#allocation8]   ;;  %s72_s12 = int_to_ptr.hbm [resolvable:$true] %s71_s12 }
   0xa   :  { %s60_s14 = sshll.u32 %s1174_s13, 4  ;;  %s1175_s3 = smov [#allocation9]   ;;  %s61_s14 = int_to_ptr.vmem [resolvable:$true] %s60_s14 }
   0xb   :  { %63 = dma.hbm_to_vmem [thread:$0]  %s59_s29, 16, %s61_s14, [#allocation7]  }
   0xc   :  { %s73_s15 = sshll.u32 %s1175_s3, 4  ;;  %s82_s18 = sshll.u32 %s1394_s10, 4  ;;  %s74_s15 = int_to_ptr.vmem [resolvable:$true] %s73_s15  ;;  %s83_s18 = int_to_ptr.hbm [resolvable:$true] %s82_s18 }
   0xd   :  { %76 = dma.hbm_to_vmem [thread:$0]  %s72_s12, 16, %s74_s15, [#allocation10]  }
   0xe   :  { %s1176_s7 = smov [#allocation11]  }
   0xf   :  { %85 = dma.hbm_to_smem %s83_s18, 16, %s1176_s7, [#allocation5]  }
  0x10   :  { %1162 = dma.done.wait [#allocation3], 16  }
  0x11   :  { %1163 = vsyncadd [#allocation3], 4294967280 }
  0x12   :  { %1164 = dma.done.wait [#allocation7], 32  }
  0x13   :  { %1165 = vsyncadd [#allocation7], 4294967264 }
  0x14   :  { %1166 = dma.done.wait [#allocation10], 16  }
  0x15   :  { %1167 = vsyncadd [#allocation10], 4294967280 }
  0x16   :  { %1168 = dma.done.wait [#allocation5], 16  }
  0x17   :  { %1169 = vsyncadd [#allocation5], 4294967280 }
  0x18   :  { %106 = sfence }
  0x19   :  { %v108_v0 = vld [vmem:[%s1384_s0] sm:$0xff]  ;;  %v1177_v1 = vmov 0   ;;  %v109_v2 = vld [vmem:[%s1384_s0 + $0x8] sm:$0xff]  ;;  %s1178_s0 = smov 64   ;;  %v110_v8 = vlaneseq  ;;  %v1179_v12 = vmov 0.0   ;;  %vm139_vm2 = vcmask 261120  }
  0x1a   :  { %975 = vset.pattern.permute.xlu0 %v1177_v1  ;;  %v955_v3 = vld [vmem:[%s1385_s1 + $0x8] sm:$0xff]  ;;  %v954_v4 = vld [vmem:[%s1385_s1] sm:$0xff]  ;;  %vm170_vm3 = vcmask 130048   ;;  %s948_s16 = sld [smem:[#allocation11 + $0x2]]  ;;  %s1181_s10 = smov [#allocation12]  }
  0x1b   :  { %113 = vperm.xlu0 %975, %v108_v0   ;;  %149 = vmatpush.bf16.msra.mxu0 %v955_v3  ;;  %v958_v5 = vld [vmem:[%s1388_s4 + $0x8] sm:$0xff]  ;;  %v976_v6 = vld [vmem:[#allocation6] ss:$0 sm:$0xff]  ;;  %v111_v10 = vand.u32 127, %v110_v8  ;;  %v1286_v24 = vld [vmem:[#allocation2] ss:$0 sm:$0xff] }
  0x1c   :  { %214 = vmatpush.bf16.msra.mxu2 %v958_v5  ;;  %v957_v7 = vld [vmem:[%s1388_s4] sm:$0xff]  ;;  %243 = vrot.lane.b32.xlu1 %v976_v6, %s1178_s0  ;;  %s949_s17 = sld [smem:[#allocation11 + $0x3]]  ;;  %s873_s20 = sshll.u32 %s1181_s10, 4  ;;  %s874_s20 = int_to_ptr.vmem [resolvable:$true] %s873_s20 }
  0x1d   :  { %279 = vmatpush.bf16.msra.mxu3 %v958_v5  ;;  %v956_v16 = vld [vmem:[%s1386_s2] sm:$0xff]  ;;  %s1180_s2 = smov 96   ;;  %s950_s18 = sld [smem:[#allocation11 + $0x4]] }
  0x1e   :  { %181 = vmatpush.bf16.msra.mxu1 %v956_v16  ;;  %s951_s7 = sld [smem:[#allocation11 + $0x5]]  ;;  %s875_s23 = sshll.u32 %s1395_s11, 4  ;;  %s876_s23 = int_to_ptr.hbm [resolvable:$true] %s875_s23 }
  0x1f   :  { %150 = vmatpush.bf16.msra.mxu0 %v954_v4  ;;  %s952_s9 = sld [smem:[#allocation11 + $0x6]]  ;;  %s1182_s24 = smov 128  }
  0x20   :  { %215 = vmatpush.bf16.msra.mxu2 %v957_v7  ;;  %s953_s19 = sld [smem:[#allocation11 + $0x7]]  ;;  %s1183_s25 = smov 8  }
  0x21   :  { %280 = vmatpush.bf16.msra.mxu3 %v957_v7 }
  0x22   :  { %347 = vmatpush.bf16.msrb.mxu1 %v958_v5 }
  0x23   :  { %116 = vperm.xlu0 %975, %v109_v2   ;;  %415 = vmatpush.bf16.msrb.mxu0 %v958_v5 }
  0x24   :  { %483 = vmatpush.bf16.msrb.mxu2 %v958_v5 }
  0x25   :  { %546 = vmatpush.bf16.msrb.mxu3 %v958_v5  ;;  %216 = vmatmul.bf16.vlgmr.msra.gmra.mxu2 %v1177_v1 }
  0x26   :  { %348 = vmatpush.bf16.msrb.mxu1 %v957_v7 }
  0x27   :  { %416 = vmatpush.bf16.msrb.mxu0 %v957_v7 }
  0x28   :  { %484 = vmatpush.bf16.msrb.mxu2 %v957_v7 }
  0x29   :  { %547 = vmatpush.bf16.msrb.mxu3 %v957_v7 }
  0x8d   :  { %v114_v9 = vpop.permute.xlu0 %113 }
  0x8e   :  { %vm118_vm0 = vcmp.eq.s32.totalorder %v111_v10, %v114_v9  ;;  %v1282_v17 = vpop.permute.xlu1 %243 }
  0x8f   :  { %v120_v13 = vsel %vm118_vm0, 1.0, %v1179_v12 }
  0x95   :  { %v117_v11 = vpop.permute.xlu0 %116 }
  0x96   :  { %vm119_vm1 = vcmp.eq.s32.totalorder %v111_v10, %v117_v11 }
  0x97   :  { %v121_v14 = vsel %vm119_vm1, 1.0, %v1179_v12 }
  0x98   :  { %v122_v15 = vpack.c.bf16 %v121_v14, %v120_v13 }
  0x9a   :  { %899 = vmatmul.msk.bf16.vlgmr.msra.gmra.mxu0 %vm139_vm2, %v122_v15 }
  0x9b   :  { %682 = vmatpush.bf16.msra.mxu0 %v958_v5 }
  0x9f   :  { %683 = vmatpush.bf16.msra.mxu0 %v957_v7 }
  0xa8   :  { %v217_v18 = vpop.f32.mrf.mxu2 }
  0xa9   :  { %v246_v19 = vadd.f32 %v1282_v17, %v217_v18 }
  0xab   :  { %248 = vrot.lane.b32.xlu1 %v246_v19, %s1178_s0 }
  0xb0   :  { %v219_v20 = vpop.f32.mrf.mxu2 }
 0x117   :  { %v152_v21 = vpop.f32.mrf.mxu0 }
 0x11d   :  { %v249_v38 = vpop.permute.xlu1 %248 }
 0x11f   :  { %v154_v22 = vpop.f32.mrf.mxu0 }
 0x120   :  { %v157_v23 = vpack.c.bf16 %v154_v22, %v152_v21 }
 0x122   :  { %904 = vmatmul.msk.bf16.vlgmr.msra.gmra.mxu1 %vm170_vm3, %v157_v23 }
 0x123   :  { %614 = vmatpush.bf16.msra.mxu1 %v958_v5 }
 0x127   :  { %615 = vmatpush.bf16.msra.mxu1 %v957_v7 }
 0x19f   :  { %v183_v25 = vpop.f32.mrf.mxu1 }
 0x1a0   :  { %v1289_v26 = vadd.f32 %v1286_v24, %v183_v25 }
 0x1a2   :  { %v221_v27 = vadd.f32 %v217_v18, %v1289_v26 }
 0x1a4   :  { %v913_v28 = vmul.f32 -1.442695, %v221_v27 }
 0x1a6   :  { %980 = vpow2.f32 %v913_v28 }
 0x1a7   :  { %v1305_v23 = vpop.f32.mrf.mxu1 }
 0x1ac   :  { %v981_v29 = vpop.eup %980 }
 0x1ad   :  { %v225_v30 = vadd.f32 1.0, %v981_v29 }
 0x1af   :  { %982 = vrcp.f32 %v225_v30  ;;  %v237_v34 = vand.u32 2147483648, %v225_v30  ;;  %v235_v36 = vand.u32 2147483647, %v225_v30  ;;  %vm231_vm5 = vweird.f32 %v225_v30 }
 0x1b1   :  { %v238_v39 = vor.u32 1.1754944e-38, %v237_v34  ;;  %vm236_vm7 = vcmp.eq.f32.partialorder %v235_v36, 8.507059e+37 }
 0x1b5   :  { %v983_v31 = vpop.eup %982 }
 0x1b6   :  { %v227_v32 = vmul.f32 %v983_v31, %v225_v30  ;;  %vm232_vm4 = vweird.f32 %v983_v31 }
 0x1b7   :  { %vm233_vm6 = vmor %vm231_vm5, %vm232_vm4 }
 0x1b8   :  { %v228_v33 = vsub.f32 1.0, %v227_v32 }
 0x1ba   :  { %v229_v35 = vmul.f32 %v983_v31, %v228_v33 }
 0x1bc   :  { %v230_v37 = vadd.f32 %v983_v31, %v229_v35 }
 0x1be   :  { %v234_v40 = vsel %vm233_vm6, %v983_v31, %v230_v37 }
 0x1bf   :  { %v239_v41 = vsel %vm236_vm7, %v238_v39, %v234_v40 }
 0x1c0   :  { %v251_v42 = vmul.f32 %v249_v38, %v239_v41  ;;  %v258_v46 = vsub.f32 1.0, %v239_v41  ;;  %v264_v48 = vmul.f32 0.0, %v239_v41 }
 0x1c2   :  { %253 = vrot.lane.b32.xlu2 %v251_v42, %s1178_s0 }
 0x21c   :  { %v254_v43 = vpop.permute.xlu2 %253 }
 0x21d   :  { %v256_v44 = vadd.f32 %v254_v43, %v1289_v26 }
 0x21f   :  { %984 = vtanh.f32 %v256_v44 }
 0x225   :  { %v985_v45 = vpop.eup %984 }
 0x226   :  { %260 = vrot.lane.b32.xlu2 %v985_v45, %s1180_s2 }
 0x280   :  { %v261_v47 = vpop.permute.xlu2 %260 }
 0x281   :  { %v263_v49 = vmul.f32 %v261_v47, %v258_v46 }
 0x283   :  { %v265_v50 = vadd.f32 %v264_v48, %v263_v49 }
 0x285   :  { %v266_v51 = vpack.c.bf16 %v265_v50, %v265_v50  ;;  %v329_v13 = vrot.slane %v265_v50, 6 }
 0x287   :  { %268 = vrot.lane.b32.xlu0 %v266_v51, %s1180_s2 }
 0x2f9   :  { %v269_v52 = vpop.permute.xlu0 %268 }
 0x2fa   :  { %914 = vmatmul.msk.bf16.vlgmr.msra.gmra.mxu3 %vm139_vm2, %v269_v52 }
 0x37d   :  { %v282_v53 = vpop.f32.mrf.mxu3 }
 0x37e   :  { %v309_v54 = vadd.f32 %v282_v53, %v1282_v17  ;;  %v287_v57 = vrot.slane %v282_v53, 6 }
 0x380   :  { %v311_v55 = vrot.slane %v309_v54, 6  ;;  %v289_v58 = vadd.f32 %v287_v57, %v1289_v26 }
 0x382   :  { %312 = vrot.lane.b32.xlu1 %v311_v55, %s1178_s0  ;;  %v915_v59 = vmul.f32 -1.442695, %v289_v58 }
 0x384   :  { %986 = vpow2.f32 %v915_v59 }
 0x385   :  { %v284_v56 = vpop.f32.mrf.mxu3 }
 0x38a   :  { %v987_v60 = vpop.eup %986 }
 0x38b   :  { %v293_v61 = vadd.f32 1.0, %v987_v60 }
 0x38d   :  { %988 = vrcp.f32 %v293_v61  ;;  %v305_v3 = vand.u32 2147483648, %v293_v61  ;;  %vm299_vm9 = vweird.f32 %v293_v61  ;;  %v303_v4 = vand.u32 2147483647, %v293_v61 }
 0x38f   :  { %v306_v6 = vor.u32 1.1754944e-38, %v305_v3  ;;  %vm304_vm11 = vcmp.eq.f32.partialorder %v303_v4, 8.507059e+37 }
 0x393   :  { %v989_v62 = vpop.eup %988 }
 0x394   :  { %v295_v63 = vmul.f32 %v989_v62, %v293_v61  ;;  %vm300_vm8 = vweird.f32 %v989_v62 }
 0x395   :  { %vm301_vm10 = vmor %vm299_vm9, %vm300_vm8 }
 0x396   :  { %v296_v0 = vsub.f32 1.0, %v295_v63 }
 0x398   :  { %v297_v1 = vmul.f32 %v989_v62, %v296_v0 }
 0x39a   :  { %v298_v2 = vadd.f32 %v989_v62, %v297_v1 }
 0x39c   :  { %v302_v5 = vsel %vm301_vm10, %v989_v62, %v298_v2 }
 0x39d   :  { %v307_v8 = vsel %vm304_vm11, %v306_v6, %v302_v5 }
 0x39e   :  { %v322_v14 = vsub.f32 1.0, %v307_v8  ;;  %v331_v16 = vmul.f32 %v329_v13, %v307_v8 }
 0x3f4   :  { %v313_v7 = vpop.permute.xlu1 %312 }
 0x3f5   :  { %v315_v9 = vmul.f32 %v313_v7, %v307_v8 }
 0x3f7   :  { %317 = vrot.lane.b32.xlu2 %v315_v9, %s1178_s0 }
 0x451   :  { %v318_v10 = vpop.permute.xlu2 %317 }
 0x452   :  { %v320_v11 = vadd.f32 %v318_v10, %v1289_v26 }
 0x454   :  { %990 = vtanh.f32 %v320_v11 }
 0x45a   :  { %v991_v12 = vpop.eup %990 }
 0x45b   :  { %324 = vrot.lane.b32.xlu0 %v991_v12, %s1180_s2 }
 0x4cd   :  { %v325_v15 = vpop.permute.xlu0 %324 }
 0x4ce   :  { %v327_v18 = vmul.f32 %v325_v15, %v322_v14 }
 0x4d0   :  { %v332_v19 = vadd.f32 %v331_v16, %v327_v18 }
 0x4d2   :  { %v333_v20 = vpack.c.bf16 %v332_v19, %v332_v19  ;;  %v397_v43 = vrot.slane %v332_v19, 6 }
 0x4d4   :  { %v335_v21 = vrot.slane %v333_v20, 1 }
 0x4d6   :  { %336 = vrot.lane.b32.xlu1 %v335_v21, %s1180_s2 }
 0x548   :  { %v337_v22 = vpop.permute.xlu1 %336 }
 0x549   :  { %916 = vmatmul.msk.bf16.vlgmr.msrb.gmra.mxu1 %vm139_vm2, %v337_v22 }
 0x5c6   :  { %v350_v25 = vpop.f32.mrf.mxu1 }
 0x5c7   :  { %v355_v27 = vrot.slane %v350_v25, 4  ;;  %v377_v28 = vadd.f32 %v350_v25, %v1282_v17 }
 0x5c9   :  { %v357_v29 = vadd.f32 %v355_v27, %v1289_v26  ;;  %v379_v30 = vrot.slane %v377_v28, 4 }
 0x5cb   :  { %v917_v31 = vmul.f32 -1.442695, %v357_v29  ;;  %380 = vrot.lane.b32.xlu2 %v379_v30, %s1178_s0 }
 0x5cd   :  { %992 = vpow2.f32 %v917_v31 }
 0x5ce   :  { %v352_v32 = vpop.f32.mrf.mxu1 }
 0x5d3   :  { %v993_v33 = vpop.eup %992 }
 0x5d4   :  { %v361_v34 = vadd.f32 1.0, %v993_v33 }
 0x5d6   :  { %994 = vrcp.f32 %v361_v34  ;;  %v373_v38 = vand.u32 2147483648, %v361_v34  ;;  %v371_v40 = vand.u32 2147483647, %v361_v34  ;;  %vm367_vm13 = vweird.f32 %v361_v34 }
 0x5d8   :  { %v374_v42 = vor.u32 1.1754944e-38, %v373_v38  ;;  %vm372_vm15 = vcmp.eq.f32.partialorder %v371_v40, 8.507059e+37 }
 0x5dc   :  { %v995_v35 = vpop.eup %994 }
 0x5dd   :  { %v363_v36 = vmul.f32 %v995_v35, %v361_v34  ;;  %vm368_vm12 = vweird.f32 %v995_v35  ;;  %v1327_v34 = vadd.f32 %v1286_v24, %v1305_v23 }
 0x5de   :  { %vm369_vm14 = vmor %vm367_vm13, %vm368_vm12 }
 0x5df   :  { %v364_v37 = vsub.f32 1.0, %v363_v36 }
 0x5e1   :  { %v365_v39 = vmul.f32 %v995_v35, %v364_v37 }
 0x5e3   :  { %v366_v41 = vadd.f32 %v995_v35, %v365_v39 }
 0x5e5   :  { %v370_v44 = vsel %vm369_vm14, %v995_v35, %v366_v41 }
 0x5e6   :  { %v375_v45 = vsel %vm372_vm15, %v374_v42, %v370_v44 }
 0x5e7   :  { %v399_v46 = vmul.f32 %v397_v43, %v375_v45  ;;  %v390_v52 = vsub.f32 1.0, %v375_v45 }
 0x625   :  { %v381_v47 = vpop.permute.xlu2 %380 }
 0x626   :  { %v383_v48 = vmul.f32 %v381_v47, %v375_v45 }
 0x628   :  { %385 = vrot.lane.b32.xlu0 %v383_v48, %s1178_s0 }
 0x69a   :  { %v386_v49 = vpop.permute.xlu0 %385 }
 0x69b   :  { %v388_v50 = vadd.f32 %v386_v49, %v1289_v26 }
 0x69d   :  { %996 = vtanh.f32 %v388_v50 }
 0x6a3   :  { %v997_v51 = vpop.eup %996 }
 0x6a4   :  { %392 = vrot.lane.b32.xlu1 %v997_v51, %s1180_s2 }
 0x716   :  { %v393_v53 = vpop.permute.xlu1 %392 }
 0x717   :  { %v395_v54 = vmul.f32 %v393_v53, %v390_v52 }
 0x719   :  { %v400_v55 = vadd.f32 %v399_v46, %v395_v54 }
 0x71b   :  { %v401_v56 = vpack.c.bf16 %v400_v55, %v400_v55  ;;  %v465_v20 = vrot.slane %v400_v55, 6 }
 0x71d   :  { %v403_v57 = vrot.slane %v401_v56, 2 }
 0x71f   :  { %404 = vrot.lane.b32.xlu2 %v403_v57, %s1180_s2 }
 0x779   :  { %v405_v58 = vpop.permute.xlu2 %404 }
 0x77a   :  { %918 = vmatmul.msk.bf16.vlgmr.msrb.gmra.mxu0 %vm139_vm2, %v405_v58 }
 0x7f7   :  { %v418_v59 = vpop.f32.mrf.mxu0 }
 0x7f8   :  { %v445_v60 = vadd.f32 %v418_v59, %v1282_v17  ;;  %v423_v63 = vrot.slane %v418_v59, 2 }
 0x7fa   :  { %v447_v61 = vrot.slane %v445_v60, 2  ;;  %v425_v0 = vadd.f32 %v423_v63, %v1289_v26 }
 0x7fc   :  { %448 = vrot.lane.b32.xlu0 %v447_v61, %s1178_s0  ;;  %v919_v1 = vmul.f32 -1.442695, %v425_v0 }
 0x7fe   :  { %998 = vpow2.f32 %v919_v1 }
 0x7ff   :  { %v420_v62 = vpop.f32.mrf.mxu0 }
 0x804   :  { %v999_v2 = vpop.eup %998 }
 0x805   :  { %v429_v3 = vadd.f32 1.0, %v999_v2 }
 0x807   :  { %1000 = vrcp.f32 %v429_v3  ;;  %v441_v9 = vand.u32 2147483648, %v429_v3  ;;  %vm435_vm1 = vweird.f32 %v429_v3  ;;  %v439_v10 = vand.u32 2147483647, %v429_v3 }
 0x809   :  { %v442_v12 = vor.u32 1.1754944e-38, %v441_v9  ;;  %vm440_vm4 = vcmp.eq.f32.partialorder %v439_v10, 8.507059e+37 }
 0x80d   :  { %v1001_v4 = vpop.eup %1000 }
 0x80e   :  { %v431_v5 = vmul.f32 %v1001_v4, %v429_v3  ;;  %vm436_vm0 = vweird.f32 %v1001_v4 }
 0x80f   :  { %vm437_vm3 = vmor %vm435_vm1, %vm436_vm0 }
 0x810   :  { %v432_v6 = vsub.f32 1.0, %v431_v5 }
 0x812   :  { %v433_v7 = vmul.f32 %v1001_v4, %v432_v6 }
 0x814   :  { %v434_v8 = vadd.f32 %v1001_v4, %v433_v7 }
 0x816   :  { %v438_v11 = vsel %vm437_vm3, %v1001_v4, %v434_v8 }
 0x817   :  { %v443_v14 = vsel %vm440_vm4, %v442_v12, %v438_v11 }
 0x818   :  { %v458_v21 = vsub.f32 1.0, %v443_v14  ;;  %v467_v25 = vmul.f32 %v465_v20, %v443_v14 }
 0x86e   :  { %v449_v13 = vpop.permute.xlu0 %448 }
 0x86f   :  { %v451_v15 = vmul.f32 %v449_v13, %v443_v14 }
 0x871   :  { %453 = vrot.lane.b32.xlu1 %v451_v15, %s1178_s0 }
 0x8e3   :  { %v454_v16 = vpop.permute.xlu1 %453 }
 0x8e4   :  { %v456_v18 = vadd.f32 %v454_v16, %v1289_v26 }
 0x8e6   :  { %1002 = vtanh.f32 %v456_v18 }
 0x8ec   :  { %v1003_v19 = vpop.eup %1002 }
 0x8ed   :  { %460 = vrot.lane.b32.xlu2 %v1003_v19, %s1180_s2 }
 0x947   :  { %v461_v22 = vpop.permute.xlu2 %460 }
 0x948   :  { %v463_v27 = vmul.f32 %v461_v22, %v458_v21 }
 0x94a   :  { %v468_v28 = vadd.f32 %v467_v25, %v463_v27 }
 0x94c   :  { %v469_v29 = vpack.c.bf16 %v468_v28, %v468_v28  ;;  %v529_v52 = vrot.slane %v468_v28, 6 }
 0x94e   :  { %v471_v30 = vrot.slane %v469_v29, 3 }
 0x950   :  { %472 = vrot.lane.b32.xlu0 %v471_v30, %s1180_s2 }
 0x9c2   :  { %v473_v31 = vpop.permute.xlu0 %472 }
 0x9c3   :  { %920 = vmatmul.msk.bf16.vlgmr.msrb.gmra.mxu2 %vm139_vm2, %v473_v31 }
 0xa46   :  { %v486_v32 = vpop.f32.mrf.mxu2 }
 0xa47   :  { %v510_v26 = vadd.f32 %v486_v32, %v1282_v17  ;;  %v490_v35 = vadd.f32 %v486_v32, %v1327_v34 }
 0xa49   :  { %512 = vrot.lane.b32.xlu1 %v510_v26, %s1178_s0  ;;  %v921_v36 = vmul.f32 -1.442695, %v490_v35 }
 0xa4b   :  { %1004 = vpow2.f32 %v921_v36 }
 0xa4e   :  { %v488_v33 = vpop.f32.mrf.mxu2 }
 0xa51   :  { %v1005_v37 = vpop.eup %1004 }
 0xa52   :  { %v494_v38 = vadd.f32 1.0, %v1005_v37 }
 0xa54   :  { %1006 = vrcp.f32 %v494_v38  ;;  %v506_v44 = vand.u32 2147483648, %v494_v38  ;;  %vm500_vm6 = vweird.f32 %v494_v38  ;;  %v504_v45 = vand.u32 2147483647, %v494_v38 }
 0xa56   :  { %v507_v24 = vor.u32 1.1754944e-38, %v506_v44  ;;  %vm505_vm8 = vcmp.eq.f32.partialorder %v504_v45, 8.507059e+37 }
 0xa5a   :  { %v1007_v39 = vpop.eup %1006 }
 0xa5b   :  { %v496_v40 = vmul.f32 %v1007_v39, %v494_v38  ;;  %vm501_vm5 = vweird.f32 %v1007_v39 }
 0xa5c   :  { %vm502_vm7 = vmor %vm500_vm6, %vm501_vm5 }
 0xa5d   :  { %v497_v41 = vsub.f32 1.0, %v496_v40 }
 0xa5f   :  { %v498_v42 = vmul.f32 %v1007_v39, %v497_v41 }
 0xa61   :  { %v499_v43 = vadd.f32 %v1007_v39, %v498_v42 }
 0xa63   :  { %v503_v46 = vsel %vm502_vm7, %v1007_v39, %v499_v43 }
 0xa64   :  { %v508_v47 = vsel %vm505_vm8, %v507_v24, %v503_v46 }
 0xa65   :  { %v522_v53 = vsub.f32 1.0, %v508_v47  ;;  %v531_v55 = vmul.f32 %v529_v52, %v508_v47 }
 0xabb   :  { %v513_v23 = vpop.permute.xlu1 %512 }
 0xabc   :  { %v515_v48 = vmul.f32 %v513_v23, %v508_v47 }
 0xabe   :  { %517 = vrot.lane.b32.xlu2 %v515_v48, %s1178_s0 }
 0xb18   :  { %v518_v49 = vpop.permute.xlu2 %517 }
 0xb19   :  { %v520_v50 = vadd.f32 %v518_v49, %v1327_v34 }
 0xb1b   :  { %1008 = vtanh.f32 %v520_v50 }
 0xb21   :  { %v1009_v51 = vpop.eup %1008 }
 0xb22   :  { %524 = vrot.lane.b32.xlu0 %v1009_v51, %s1180_s2 }
 0xb94   :  { %v525_v54 = vpop.permute.xlu0 %524 }
 0xb95   :  { %v527_v56 = vmul.f32 %v525_v54, %v522_v53 }
 0xb97   :  { %v532_v57 = vadd.f32 %v531_v55, %v527_v56 }
 0xb99   :  { %v533_v58 = vpack.c.bf16 %v532_v57, %v532_v57  ;;  %v596_v13 = vrot.slane %v532_v57, 6 }
 0xb9b   :  { %535 = vrot.lane.b32.xlu1 %v533_v58, %s1180_s2 }
 0xc0d   :  { %v536_v59 = vpop.permute.xlu1 %535 }
 0xc0e   :  { %922 = vmatmul.msk.bf16.vlgmr.msrb.gmra.mxu3 %vm139_vm2, %v536_v59 }
 0xc91   :  { %v549_v60 = vpop.f32.mrf.mxu3 }
 0xc92   :  { %v554_v61 = vrot.slane %v549_v60, 6  ;;  %v576_v62 = vadd.f32 %v549_v60, %v1282_v17 }
 0xc94   :  { %v556_v63 = vadd.f32 %v554_v61, %v1327_v34  ;;  %v578_v0 = vrot.slane %v576_v62, 6 }
 0xc96   :  { %v923_v1 = vmul.f32 -1.442695, %v556_v63  ;;  %579 = vrot.lane.b32.xlu2 %v578_v0, %s1178_s0 }
 0xc98   :  { %1010 = vpow2.f32 %v923_v1 }
 0xc99   :  { %v551_v2 = vpop.f32.mrf.mxu3 }
 0xc9e   :  { %v1011_v3 = vpop.eup %1010 }
 0xc9f   :  { %v560_v4 = vadd.f32 1.0, %v1011_v3 }
 0xca1   :  { %1012 = vrcp.f32 %v560_v4  ;;  %v572_v8 = vand.u32 2147483648, %v560_v4  ;;  %v570_v10 = vand.u32 2147483647, %v560_v4  ;;  %vm566_vm10 = vweird.f32 %v560_v4 }
 0xca3   :  { %v573_v12 = vor.u32 1.1754944e-38, %v572_v8  ;;  %vm571_vm12 = vcmp.eq.f32.partialorder %v570_v10, 8.507059e+37 }
 0xca7   :  { %v1013_v5 = vpop.eup %1012 }
 0xca8   :  { %v562_v6 = vmul.f32 %v1013_v5, %v560_v4  ;;  %vm567_vm9 = vweird.f32 %v1013_v5 }
 0xca9   :  { %vm568_vm11 = vmor %vm566_vm10, %vm567_vm9 }
 0xcaa   :  { %v563_v7 = vsub.f32 1.0, %v562_v6 }
 0xcac   :  { %v564_v9 = vmul.f32 %v1013_v5, %v563_v7 }
 0xcae   :  { %v565_v11 = vadd.f32 %v1013_v5, %v564_v9 }
 0xcb0   :  { %v569_v14 = vsel %vm568_vm11, %v1013_v5, %v565_v11 }
 0xcb1   :  { %v574_v15 = vsel %vm571_vm12, %v573_v12, %v569_v14 }
 0xcb2   :  { %v598_v16 = vmul.f32 %v596_v13, %v574_v15  ;;  %v589_v25 = vsub.f32 1.0, %v574_v15 }
 0xcf0   :  { %v580_v18 = vpop.permute.xlu2 %579 }
 0xcf1   :  { %v582_v19 = vmul.f32 %v580_v18, %v574_v15 }
 0xcf3   :  { %584 = vrot.lane.b32.xlu0 %v582_v19, %s1178_s0 }
 0xd65   :  { %v585_v20 = vpop.permute.xlu0 %584 }
 0xd66   :  { %v587_v21 = vadd.f32 %v585_v20, %v1327_v34 }
 0xd68   :  { %1014 = vtanh.f32 %v587_v21 }
 0xd6e   :  { %v1015_v22 = vpop.eup %1014 }
 0xd6f   :  { %591 = vrot.lane.b32.xlu1 %v1015_v22, %s1180_s2 }
 0xde1   :  { %v592_v27 = vpop.permute.xlu1 %591 }
 0xde2   :  { %v594_v28 = vmul.f32 %v592_v27, %v589_v25  ;;  %v960_v27 = vld [vmem:[%s1390_s6 + $0x8] sm:$0xff] }
 0xde3   :  { %770 = vmatpush.bf16.msra.mxu2 %v960_v27 }
 0xde4   :  { %v599_v29 = vadd.f32 %v598_v16, %v594_v28  ;;  %v962_v28 = vld [vmem:[%s1392_s8 + $0x8] sm:$0xff] }
 0xde5   :  { %804 = vmatpush.bf16.msra.mxu3 %v962_v28  ;;  %821 = vmatpush.bf16.msrb.mxu1 %v962_v28 }
 0xde6   :  { %v600_v30 = vpack.c.bf16 %v599_v29, %v599_v29  ;;  %v664_v55 = vrot.slane %v599_v29, 6  ;;  %v959_v29 = vld [vmem:[%s1390_s6] sm:$0xff]  ;;  %s828_s6 = sld [smem:[#allocation11]] }
 0xde7   :  { %771 = vmatpush.bf16.msra.mxu2 %v959_v29 }
 0xde8   :  { %v602_v31 = vrot.slane %v600_v30, 1 }
 0xdea   :  { %603 = vrot.lane.b32.xlu2 %v602_v31, %s1180_s2 }
 0xe44   :  { %v604_v32 = vpop.permute.xlu2 %603 }
 0xe45   :  { %924 = vmatmul.msk.bf16.vlgmr.msra.gmra.mxu1 %vm139_vm2, %v604_v32 }
 0xec2   :  { %v617_v26 = vpop.f32.mrf.mxu1 }
 0xec3   :  { %v644_v33 = vadd.f32 %v617_v26, %v1282_v17  ;;  %v622_v37 = vrot.slane %v617_v26, 4 }
 0xec5   :  { %v646_v35 = vrot.slane %v644_v33, 4  ;;  %v624_v38 = vadd.f32 %v622_v37, %v1327_v34 }
 0xec7   :  { %647 = vrot.lane.b32.xlu0 %v646_v35, %s1178_s0  ;;  %v925_v39 = vmul.f32 -1.442695, %v624_v38 }
 0xec9   :  { %1016 = vpow2.f32 %v925_v39  ;;  %v978_v39 = vld [vmem:[#allocation8] ss:$0 sm:$0xff] }
 0xeca   :  { %v619_v36 = vpop.f32.mrf.mxu1 }
 0xecf   :  { %v1017_v40 = vpop.eup %1016 }
 0xed0   :  { %v628_v41 = vadd.f32 1.0, %v1017_v40 }
 0xed2   :  { %1018 = vrcp.f32 %v628_v41  ;;  %v640_v24 = vand.u32 2147483648, %v628_v41  ;;  %vm634_vm14 = vweird.f32 %v628_v41  ;;  %v638_v23 = vand.u32 2147483647, %v628_v41 }
 0xed4   :  { %v641_v48 = vor.u32 1.1754944e-38, %v640_v24  ;;  %vm639_vm0 = vcmp.eq.f32.partialorder %v638_v23, 8.507059e+37  ;;  %v979_v24 = vld [vmem:[#allocation9] ss:$0 sm:$0xff]  ;;  %v829_v23 = vstv %s828_s6 }
 0xed8   :  { %v1019_v42 = vpop.eup %1018 }
 0xed9   :  { %v630_v43 = vmul.f32 %v1019_v42, %v628_v41  ;;  %vm635_vm13 = vweird.f32 %v1019_v42 }
 0xeda   :  { %vm636_vm15 = vmor %vm634_vm14, %vm635_vm13 }
 0xedb   :  { %v631_v44 = vsub.f32 1.0, %v630_v43 }
 0xedd   :  { %v632_v45 = vmul.f32 %v1019_v42, %v631_v44 }
 0xedf   :  { %v633_v46 = vadd.f32 %v1019_v42, %v632_v45 }
 0xee1   :  { %v637_v47 = vsel %vm636_vm15, %v1019_v42, %v633_v46 }
 0xee2   :  { %v642_v50 = vsel %vm639_vm0, %v641_v48, %v637_v47  ;;  %v840_v48 = vstv %s948_s16 }
 0xee3   :  { %v657_v56 = vsub.f32 1.0, %v642_v50  ;;  %v666_v58 = vmul.f32 %v664_v55, %v642_v50  ;;  %v865_v55 = vstv %s953_s19 }
 0xf39   :  { %v648_v49 = vpop.permute.xlu0 %647 }
 0xf3a   :  { %v650_v51 = vmul.f32 %v648_v49, %v642_v50  ;;  %v845_v49 = vstv %s949_s17  ;;  %v850_v50 = vstv %s950_s18 }
 0xf3c   :  { %652 = vrot.lane.b32.xlu1 %v650_v51, %s1178_s0  ;;  %v855_v51 = vstv %s951_s7 }
 0xfae   :  { %v653_v52 = vpop.permute.xlu1 %652 }
 0xfaf   :  { %v655_v53 = vadd.f32 %v653_v52, %v1327_v34 }
 0xfb1   :  { %1020 = vtanh.f32 %v655_v53 }
 0xfb7   :  { %v1021_v54 = vpop.eup %1020 }
 0xfb8   :  { %659 = vrot.lane.b32.xlu2 %v1021_v54, %s1180_s2  ;;  %v860_v54 = vstv %s952_s9 }
0x1012   :  { %v660_v57 = vpop.permute.xlu2 %659 }
0x1013   :  { %v662_v59 = vmul.f32 %v660_v57, %v657_v56 }
0x1015   :  { %v667_v60 = vadd.f32 %v666_v58, %v662_v59 }
0x1017   :  { %v668_v61 = vpack.c.bf16 %v667_v60, %v667_v60  ;;  %v732_v30 = vrot.slane %v667_v60, 6 }
0x1019   :  { %v670_v62 = vrot.slane %v668_v61, 2 }
0x101b   :  { %671 = vrot.lane.b32.xlu0 %v670_v62, %s1180_s2 }
0x108d   :  { %v672_v63 = vpop.permute.xlu0 %671 }
0x108e   :  { %926 = vmatmul.msk.bf16.vlgmr.msra.gmra.mxu0 %vm139_vm2, %v672_v63 }
0x110b   :  { %v685_v0 = vpop.f32.mrf.mxu0 }
0x110c   :  { %v712_v1 = vadd.f32 %v685_v0, %v1282_v17  ;;  %v690_v4 = vrot.slane %v685_v0, 2 }
0x110e   :  { %v714_v2 = vrot.slane %v712_v1, 2  ;;  %v692_v5 = vadd.f32 %v690_v4, %v1327_v34 }
0x1110   :  { %715 = vrot.lane.b32.xlu1 %v714_v2, %s1178_s0  ;;  %v927_v6 = vmul.f32 -1.442695, %v692_v5 }
0x1112   :  { %1022 = vpow2.f32 %v927_v6 }
0x1113   :  { %v687_v3 = vpop.f32.mrf.mxu0 }
0x1118   :  { %v1023_v7 = vpop.eup %1022 }
0x1119   :  { %v696_v8 = vadd.f32 1.0, %v1023_v7 }
0x111b   :  { %1024 = vrcp.f32 %v696_v8  ;;  %v708_v14 = vand.u32 2147483648, %v696_v8  ;;  %vm702_vm3 = vweird.f32 %v696_v8  ;;  %v706_v17 = vand.u32 2147483647, %v696_v8 }
0x111d   :  { %v709_v16 = vor.u32 1.1754944e-38, %v708_v14  ;;  %vm707_vm5 = vcmp.eq.f32.partialorder %v706_v17, 8.507059e+37 }
0x1121   :  { %v1025_v9 = vpop.eup %1024 }
0x1122   :  { %v698_v10 = vmul.f32 %v1025_v9, %v696_v8  ;;  %vm703_vm1 = vweird.f32 %v1025_v9 }
0x1123   :  { %vm704_vm4 = vmor %vm702_vm3, %vm703_vm1 }
0x1124   :  { %v699_v11 = vsub.f32 1.0, %v698_v10 }
0x1126   :  { %v700_v12 = vmul.f32 %v1025_v9, %v699_v11 }
0x1128   :  { %v701_v13 = vadd.f32 %v1025_v9, %v700_v12 }
0x112a   :  { %v705_v15 = vsel %vm704_vm4, %v1025_v9, %v701_v13 }
0x112b   :  { %v710_v19 = vsel %vm707_vm5, %v709_v16, %v705_v15 }
0x112c   :  { %v725_v31 = vsub.f32 1.0, %v710_v19  ;;  %v734_v26 = vmul.f32 %v732_v30, %v710_v19 }
0x1182   :  { %v716_v18 = vpop.permute.xlu1 %715 }
0x1183   :  { %v718_v20 = vmul.f32 %v716_v18, %v710_v19 }
0x1185   :  { %720 = vrot.lane.b32.xlu2 %v718_v20, %s1178_s0 }
0x11df   :  { %v721_v21 = vpop.permute.xlu2 %720 }
0x11e0   :  { %v723_v22 = vadd.f32 %v721_v21, %v1327_v34  ;;  %v961_v34 = vld [vmem:[%s1392_s8] sm:$0xff]  ;;  %s947_s8 = sld [smem:[#allocation11 + $0x1]] }
0x11e1   :  { %805 = vmatpush.bf16.msra.mxu3 %v961_v34  ;;  %822 = vmatpush.bf16.msrb.mxu1 %v961_v34 }
0x11e2   :  { %1026 = vtanh.f32 %v723_v22 }
0x11e6   :  { %v835_v47 = vstv %s947_s8 }
0x11e8   :  { %v1027_v25 = vpop.eup %1026 }
0x11e9   :  { %727 = vrot.lane.b32.xlu0 %v1027_v25, %s1180_s2 }
0x125b   :  { %v728_v32 = vpop.permute.xlu0 %727 }
0x125c   :  { %v730_v33 = vmul.f32 %v728_v32, %v725_v31 }
0x125e   :  { %v735_v35 = vadd.f32 %v734_v26, %v730_v33 }
0x1260   :  { %v736_v36 = vpack.c.bf16 %v735_v35, %v735_v35 }
0x1262   :  { %v746_v37 = vrot.slane %v736_v36, 3 }
0x1264   :  { %747 = vrot.lane.b32.xlu1 %v746_v37, %s1180_s2 }
0x12d6   :  { %v748_v38 = vpop.permute.xlu1 %747 }
0x12d7   :  { %936 = vmatmul.msk.bf16.vlgmr.msra.gmra.mxu2 %vm139_vm2, %v748_v38  ;;  %945 = vmatmul.msk.bf16.vlgmr.msra.gmra.mxu3 %vm139_vm2, %v748_v38 }
0x135a   :  { %v773_v40 = vpop.f32.mrf.mxu2  ;;  %v807_v41 = vpop.f32.mrf.mxu3 }
0x135b   :  { %v774_v42 = vadd.f32 %v978_v39, %v773_v40  ;;  %v808_v52 = vadd.f32 %v979_v24, %v807_v41 }
0x135d   :  { %1028 = vtanh.f32 %v774_v42 }
0x1362   :  { %v775_v43 = vpop.f32.mrf.mxu2  ;;  %v809_v44 = vpop.f32.mrf.mxu3 }
0x1363   :  { %v1029_v45 = vpop.eup %1028 }
0x1364   :  { %v811_v46 = vpack.c.bf16 %v1029_v45, %v1029_v45 }
0x1366   :  { %946 = vmatmul.msk.bf16.vlgmr.msrb.gmra.mxu1 %vm139_vm2, %v811_v46  ;;  %vm832_vm2 = vcmask 254976  }
0x13e3   :  { %v824_v53 = vpop.f32.mrf.mxu1 }
0x13e4   :  { %v830_v56 = vmul.f32 %v829_v23, %v824_v53  ;;  %v836_v57 = vmul.f32 %v835_v47, %v824_v53  ;;  %v841_v58 = vmul.f32 %v840_v48, %v824_v53  ;;  %v846_v59 = vmul.f32 %v845_v49, %v824_v53 }
0x13e5   :  { %v851_v60 = vmul.f32 %v850_v50, %v824_v53  ;;  %v856_v61 = vmul.f32 %v855_v51, %v824_v53  ;;  %v861_v1 = vmul.f32 %v860_v54, %v824_v53  ;;  %v866_v3 = vmul.f32 %v865_v55, %v824_v53 }
0x13e6   :  { %v831_v62 = vadd.f32 %v830_v56, %v808_v52  ;;  %v837_v63 = vadd.f32 %v836_v57, %v808_v52  ;;  %v842_v0 = vadd.f32 %v841_v58, %v808_v52  ;;  %v847_v2 = vadd.f32 %v846_v59, %v808_v52 }
0x13e7   :  { %v852_v4 = vadd.f32 %v851_v60, %v808_v52  ;;  %v857_v5 = vadd.f32 %v856_v61, %v808_v52  ;;  %v862_v6 = vadd.f32 %v861_v1, %v808_v52  ;;  %v867_v7 = vadd.f32 %v866_v3, %v808_v52 }
0x13e8   :  { %833 = vst.msk [vmem:[#allocation12] sm:$0x3] %vm832_vm2, %v831_v62 }
0x13e9   :  { %838 = vst.msk [vmem:[#allocation12 + $0x2] sm:$0x3] %vm832_vm2, %v837_v63 }
0x13ea   :  { %843 = vst.msk [vmem:[#allocation12 + $0x4] sm:$0x3] %vm832_vm2, %v842_v0 }
0x13eb   :  { %848 = vst.msk [vmem:[#allocation12 + $0x6] sm:$0x3] %vm832_vm2, %v847_v2  ;;  %v826_v8 = vpop.f32.mrf.mxu1 }
0x13ec   :  { %853 = vst.msk [vmem:[#allocation12 + $0x8] sm:$0x3] %vm832_vm2, %v852_v4 }
0x13ed   :  { %858 = vst.msk [vmem:[#allocation12 + $0xa] sm:$0x3] %vm832_vm2, %v857_v5 }
0x13ee   :  { %863 = vst.msk [vmem:[#allocation12 + $0xc] sm:$0x3] %vm832_vm2, %v862_v6 }
0x13ef   :  { %868 = vst.msk [vmem:[#allocation12 + $0xe] sm:$0x3] %vm832_vm2, %v867_v7 }
0x13f0   :  { %881 = dma.vmem_to_hbm [thread:$0]  %s874_s20, 256, %s876_s23, [#allocation4], %s1182_s24, %s1182_s24, %s1183_s25  }
0x13f1   :  { %1170 = dma.done.wait [#allocation4], 256  }
0x13f2   :  { %1171 = vsyncadd [#allocation4], 4294967040 }
0x13f3   :  { %886 = vsyncpa [#allocation3], 1 }
0x13f4   :  { %887 = vsyncpa [#allocation7], 1 }
0x13f5   :  { %888 = vsyncpa [#allocation10], 1 }
0x13f6   :  { %889 = vsyncpa [#allocation4], 1 }
0x13f7   :  { %890 = vsyncpa [#allocation5], 1 }

</bundles_post_ra>
